<compile_context>
chip_gen: v5e
topology: v5e:2x2
jax: 0.10.0
libtpu: 0.0.40
codegen_flags: <defaults>
</compile_context>

<pallas_src>
import jax
import jax.numpy as jnp
from jax.experimental import pallas as pl
from jax.experimental.pallas import tpu as pltpu

LANE = 128


def _round_up(x, m):
    return ((x + m - 1) // m) * m


def joint_heads_kernel(mask_pos_ref,                        # SMEM scalar prefetch [B]
                       issue_ref, share_ref,                # (S, Hp) bf16
                       w_plm_ref, b_plm_ref,                # (Hp, Hp) bf16, (1, Hp) f32
                       w_issue_ref, b_issue_ref,            # (Hp, Ip) bf16, (1, Ip) f32
                       w_pivot_ref, b_pivot_ref,            # (Hp, Pp) bf16, (1, Pp) f32
                       label_emb_ref,                       # (Hp, Lp) bf16
                       mlm_ref, issue_out_ref, label_out_ref,
                       seq_scratch):                        # VMEM (S, Hp) f32
    S = issue_ref.shape[0]
    b = pl.program_id(0)

    issue_e = issue_ref[...].astype(jnp.float32)
    share_e = share_ref[...].astype(jnp.float32)

    # avg_batch['inputs_embeds'] = (issue + share) / 2
    avg_e = (issue_e + share_e) * 0.5

    # TODO(synk): real transformer PLM not translatable; deterministic stand-in.
    # Fused PLM stand-in: one MXU pass over [avg ; issue] against w_plm.
    x = jnp.concatenate([avg_e, issue_e], axis=0).astype(jnp.bfloat16)   # (2S, Hp)
    h = jnp.tanh(
        jnp.dot(x, w_plm_ref[...], preferred_element_type=jnp.float32)
        + b_plm_ref[...])                                                # (2S, Hp) f32

    seq_out = h[:S]          # sequence output of the "avg" pass    (S, Hp)
    issue_seq = h[S:]        # sequence output of the "issue" pass  (S, Hp)

    # pooled output of the issue pass -> issue_logits = issue_fc(pooled)
    pooled = jnp.mean(issue_seq, axis=0, keepdims=True)                  # (1, Hp)
    issue_out_ref[...] = (
        jnp.dot(pooled.astype(jnp.bfloat16), w_issue_ref[...],
                preferred_element_type=jnp.float32) + b_issue_ref[...])

    # mlm_logits = pivot_fc(seq_out)   (lane-dense, padded pivot dim)
    mlm_ref[...] = (
        jnp.dot(seq_out.astype(jnp.bfloat16), w_pivot_ref[...],
                preferred_element_type=jnp.float32) + b_pivot_ref[...])

    # extract_at_mask: exactly one <mask> per example; position comes from SMEM.
    seq_scratch[...] = seq_out
    at_mask = seq_scratch[pl.ds(mask_pos_ref[b], 1), :]                  # (1, Hp)

    # label_words_logits = sigmoid(outputs_at_mask @ label_emb.T)
    lwl = jnp.dot(at_mask.astype(jnp.bfloat16), label_emb_ref[...],
                  preferred_element_type=jnp.float32)
    label_out_ref[...] = jax.nn.sigmoid(lwl)


def joint_forward(issue_embeds, share_embeds, loss_ids, params):
    B, S, H = issue_embeds.shape
    issue_num = params["w_issue"].shape[0]
    pivot_num = params["w_pivot"].shape[0]
    num_labels = params["label_emb"].shape[0]

    Hp = _round_up(H, LANE)
    Ip = _round_up(issue_num, LANE)
    Pp = _round_up(pivot_num, LANE)
    Lp = _round_up(num_labels, LANE)

    def pad2(x, r, c, dtype):
        return jnp.pad(x, ((0, r - x.shape[0]), (0, c - x.shape[1]))).astype(dtype)

    # Wrapper-side layout plumbing: lane-dense padding, pre-transposed head
    # weights ([H, out]), bf16 MXU operands.
    issue_p = jnp.pad(issue_embeds, ((0, 0), (0, 0), (0, Hp - H))).astype(jnp.bfloat16)
    share_p = jnp.pad(share_embeds, ((0, 0), (0, 0), (0, Hp - H))).astype(jnp.bfloat16)
    w_plm_p = pad2(params["w_plm"], Hp, Hp, jnp.bfloat16)
    b_plm_p = pad2(params["b_plm"], 1, Hp, jnp.float32)
    w_issue_t = pad2(params["w_issue"].T, Hp, Ip, jnp.bfloat16)
    b_issue_p = pad2(params["b_issue"], 1, Ip, jnp.float32)
    w_pivot_t = pad2(params["w_pivot"].T, Hp, Pp, jnp.bfloat16)
    b_pivot_p = pad2(params["b_pivot"], 1, Pp, jnp.float32)
    label_emb_t = pad2(params["label_emb"].T, Hp, Lp, jnp.bfloat16)

    # one <mask> position per example (extract_at_mask assumption)
    mask_pos = jnp.argmax(loss_ids > 0, axis=1).astype(jnp.int32)        # [B]

    def full2(r, c):
        return pl.BlockSpec((r, c), lambda b, *_: (0, 0))

    grid_spec = pltpu.PrefetchScalarGridSpec(
        num_scalar_prefetch=1,
        grid=(B,),
        in_specs=[
            pl.BlockSpec((None, S, Hp), lambda b, *_: (b, 0, 0)),  # issue embeds
            pl.BlockSpec((None, S, Hp), lambda b, *_: (b, 0, 0)),  # share embeds
            full2(Hp, Hp), full2(1, Hp),
            full2(Hp, Ip), full2(1, Ip),
            full2(Hp, Pp), full2(1, Pp),
            full2(Hp, Lp),
        ],
        out_specs=[
            pl.BlockSpec((None, S, Pp), lambda b, *_: (b, 0, 0)),  # mlm logits
            pl.BlockSpec((None, 1, Ip), lambda b, *_: (b, 0, 0)),  # issue logits
            pl.BlockSpec((None, 1, Lp), lambda b, *_: (b, 0, 0)),  # label logits
        ],
        scratch_shapes=[pltpu.VMEM((S, Hp), jnp.float32)],
    )

    out_shapes = (
        jax.ShapeDtypeStruct((B, S, Pp), jnp.float32),
        jax.ShapeDtypeStruct((B, 1, Ip), jnp.float32),
        jax.ShapeDtypeStruct((B, 1, Lp), jnp.float32),
    )

    mlm_p, issue_lp, label_lp = pl.pallas_call(
        joint_heads_kernel,
        out_shape=out_shapes,
        grid_spec=grid_spec,
        compiler_params=pltpu.CompilerParams(
            dimension_semantics=("parallel",),
            vmem_limit_bytes=32 * 1024 * 1024,
        ),
    )(mask_pos, issue_p, share_p, w_plm_p, b_plm_p,
      w_issue_t, b_issue_p, w_pivot_t, b_pivot_p, label_emb_t)

    mlm_logits = mlm_p.reshape(B * S, Pp)[:, :pivot_num]
    issue_logits = issue_lp[:, 0, :issue_num]
    label_logits = label_lp[:, 0, :num_labels]
    return label_logits, issue_logits, mlm_logits


def reference_forward(issue_embeds, share_embeds, loss_ids, params):
    avg = (issue_embeds + share_embeds) * 0.5
    seq_out = jnp.tanh(jnp.einsum("bsh,hd->bsd", avg, params["w_plm"])
                       + params["b_plm"][0])
    issue_seq = jnp.tanh(jnp.einsum("bsh,hd->bsd", issue_embeds, params["w_plm"])
                         + params["b_plm"][0])
    pooled = jnp.mean(issue_seq, axis=1)
    issue_logits = pooled @ params["w_issue"].T + params["b_issue"][0]
    mlm_logits = (jnp.einsum("bsh,ph->bsp", seq_out, params["w_pivot"])
                  + params["b_pivot"][0]).reshape(-1, params["w_pivot"].shape[0])
    mask = (loss_ids > 0).astype(jnp.float32)
    at_mask = jnp.sum(mask[:, :, None] * seq_out, axis=1)
    label_logits = jax.nn.sigmoid(at_mask @ params["label_emb"].T)
    return label_logits, issue_logits, mlm_logits


if __name__ == "__main__":
    B, S, H = 2, 8, 32
    issue_num, pivot_num, num_labels = 4, 6, 5

    key = jax.random.PRNGKey(0)
    ks = jax.random.split(key, 8)

    def xavier_uniform(k, shape):
        fan_out, fan_in = shape
        bound = (6.0 / (fan_in + fan_out)) ** 0.5
        return jax.random.uniform(k, shape, jnp.float32, -bound, bound)

    params = {
        "w_plm": jax.random.normal(ks[0], (H, H), jnp.float32) * 0.1,
        "b_plm": jnp.zeros((1, H), jnp.float32),
        "w_issue": xavier_uniform(ks[1], (issue_num, H)),     # _init_fc_weights
        "b_issue": jnp.zeros((1, issue_num), jnp.float32),
        "w_pivot": xavier_uniform(ks[2], (pivot_num, H)),
        "b_pivot": jnp.zeros((1, pivot_num), jnp.float32),
        "label_emb": jax.random.normal(ks[3], (num_labels, H), jnp.float32),
    }

    issue_embeds = jax.random.normal(ks[4], (B, S, H), jnp.float32)
    share_embeds = jax.random.normal(ks[5], (B, S, H), jnp.float32)
    # one <mask> per example (different positions exercise the prefetched index)
    loss_ids = jnp.zeros((B, S), jnp.int32).at[0, 3].set(1).at[1, 5].set(1)

    outs = joint_forward(issue_embeds, share_embeds, loss_ids, params)
    outs = jax.block_until_ready(outs)

    refs = reference_forward(issue_embeds, share_embeds, loss_ids, params)
    for o, r in zip(outs, refs):
        assert o.shape == r.shape and o.dtype == r.dtype
        # tolerance accounts for bf16 MXU operands vs f32 reference
        assert jnp.allclose(o, r, atol=2.5e-2, rtol=2.5e-2), "mismatch vs reference"

    print("KERNEL_OK")
</pallas_src>

<mosaic_0001>
module attributes {stable_mosaic.version = 11 : i64} {
  func.func @joint_heads_kernel(%arg0: i32, %arg1: memref<2xi32, #tpu.memory_space<smem>>, %arg2: memref<1x8x128xbf16, #tpu.memory_space<vmem>>, %arg3: memref<1x8x128xbf16, #tpu.memory_space<vmem>>, %arg4: memref<128x128xbf16, #tpu.memory_space<vmem>>, %arg5: memref<1x128xf32, #tpu.memory_space<vmem>>, %arg6: memref<128x128xbf16, #tpu.memory_space<vmem>>, %arg7: memref<1x128xf32, #tpu.memory_space<vmem>>, %arg8: memref<128x128xbf16, #tpu.memory_space<vmem>>, %arg9: memref<1x128xf32, #tpu.memory_space<vmem>>, %arg10: memref<128x128xbf16, #tpu.memory_space<vmem>>, %arg11: memref<1x8x128xf32, #tpu.memory_space<vmem>>, %arg12: memref<1x1x128xf32, #tpu.memory_space<vmem>>, %arg13: memref<1x1x128xf32, #tpu.memory_space<vmem>>, %arg14: memref<8x128xf32, #tpu.memory_space<vmem>>) attributes {dimension_semantics = [#tpu.dimension_semantics<parallel>], iteration_bounds = array<i64: 2>, scalar_prefetch = 1 : i64, scratch_operands = 1 : i64, tpu.core_type = #tpu.core_type<tc>, window_params = [{transform_indices = @transform_0, window_bounds = array<i64: 1, 8, 128>}, {transform_indices = @transform_1, window_bounds = array<i64: 1, 8, 128>}, {pipeline_mode = #tpu.pipeline_mode<synchronous>, transform_indices = @transform_2, window_bounds = array<i64: 128, 128>}, {pipeline_mode = #tpu.pipeline_mode<synchronous>, transform_indices = @transform_3, window_bounds = array<i64: 1, 128>}, {pipeline_mode = #tpu.pipeline_mode<synchronous>, transform_indices = @transform_4, window_bounds = array<i64: 128, 128>}, {pipeline_mode = #tpu.pipeline_mode<synchronous>, transform_indices = @transform_5, window_bounds = array<i64: 1, 128>}, {pipeline_mode = #tpu.pipeline_mode<synchronous>, transform_indices = @transform_6, window_bounds = array<i64: 128, 128>}, {pipeline_mode = #tpu.pipeline_mode<synchronous>, transform_indices = @transform_7, window_bounds = array<i64: 1, 128>}, {pipeline_mode = #tpu.pipeline_mode<synchronous>, transform_indices = @transform_8, window_bounds = array<i64: 128, 128>}, {transform_indices = @transform_9, window_bounds = array<i64: 1, 8, 128>}, {transform_indices = @transform_10, window_bounds = array<i64: 1, 1, 128>}, {transform_indices = @transform_11, window_bounds = array<i64: 1, 1, 128>}]} {
    %c0 = arith.constant 0 : index
    %c0_0 = arith.constant 0 : index
    %c0_1 = arith.constant 0 : index
    %0 = vector.load %arg2[%c0, %c0_0, %c0_1] : memref<1x8x128xbf16, #tpu.memory_space<vmem>>, vector<1x8x128xbf16>
    %1 = vector.shape_cast %0 : vector<1x8x128xbf16> to vector<8x128xbf16>
    %2 = arith.extf %1 : vector<8x128xbf16> to vector<8x128xf32>
    %c0_2 = arith.constant 0 : index
    %c0_3 = arith.constant 0 : index
    %c0_4 = arith.constant 0 : index
    %3 = vector.load %arg3[%c0_2, %c0_3, %c0_4] : memref<1x8x128xbf16, #tpu.memory_space<vmem>>, vector<1x8x128xbf16>
    %4 = vector.shape_cast %3 : vector<1x8x128xbf16> to vector<8x128xbf16>
    %5 = arith.extf %4 : vector<8x128xbf16> to vector<8x128xf32>
    %6 = arith.addf %2, %5 : vector<8x128xf32>
    %cst = arith.constant 5.000000e-01 : f32
    %7 = vector.broadcast %cst : f32 to vector<8x128xf32>
    %8 = arith.mulf %6, %7 : vector<8x128xf32>
    %9 = tpu.concatenate %8, %2 in 0 : vector<8x128xf32>, vector<8x128xf32> -> vector<16x128xf32>
    %10 = arith.truncf %9 : vector<16x128xf32> to vector<16x128xbf16>
    %c0_5 = arith.constant 0 : index
    %c0_6 = arith.constant 0 : index
    %11 = vector.load %arg4[%c0_5, %c0_6] : memref<128x128xbf16, #tpu.memory_space<vmem>>, vector<128x128xbf16>
    %cst_7 = arith.constant dense<0.000000e+00> : vector<16x128xf32>
    %12 = tpu.matmul %10, %11, %cst_7 {dimension_numbers = #tpu.dot_dimension_numbers<[1], [0], [0], [1], [0, 0, 1, 1], [], []>} : vector<16x128xbf16>, vector<128x128xbf16>, vector<16x128xf32> -> vector<16x128xf32>
    %c0_8 = arith.constant 0 : index
    %c0_9 = arith.constant 0 : index
    %13 = vector.load %arg5[%c0_8, %c0_9] : memref<1x128xf32, #tpu.memory_space<vmem>>, vector<1x128xf32>
    %14 = vector.broadcast %13 : vector<1x128xf32> to vector<16x128xf32>
    %15 = arith.addf %12, %14 : vector<16x128xf32>
    %16 = math.tanh %15 : vector<16x128xf32>
    %17 = vector.extract_strided_slice %16 {offsets = [0, 0], sizes = [8, 128], strides = [1, 1]} : vector<16x128xf32> to vector<8x128xf32>
    %18 = vector.extract_strided_slice %16 {offsets = [8, 0], sizes = [8, 128], strides = [1, 1]} : vector<16x128xf32> to vector<8x128xf32>
    %cst_10 = arith.constant dense<0.000000e+00> : vector<128xf32>
    %19 = vector.multi_reduction <add>, %18, %cst_10 [0] : vector<8x128xf32> to vector<128xf32>
    %20 = vector.shape_cast %19 : vector<128xf32> to vector<1x128xf32>
    %cst_11 = arith.constant 8.000000e+00 : f32
    %21 = vector.broadcast %cst_11 : f32 to vector<1x128xf32>
    %22 = arith.divf %20, %21 : vector<1x128xf32>
    %23 = arith.truncf %22 : vector<1x128xf32> to vector<1x128xbf16>
    %c0_12 = arith.constant 0 : index
    %c0_13 = arith.constant 0 : index
    %24 = vector.load %arg6[%c0_12, %c0_13] : memref<128x128xbf16, #tpu.memory_space<vmem>>, vector<128x128xbf16>
    %cst_14 = arith.constant dense<0.000000e+00> : vector<1x128xf32>
    %25 = tpu.matmul %23, %24, %cst_14 {dimension_numbers = #tpu.dot_dimension_numbers<[1], [0], [0], [1], [0, 0, 1, 1], [], []>} : vector<1x128xbf16>, vector<128x128xbf16>, vector<1x128xf32> -> vector<1x128xf32>
    %c0_15 = arith.constant 0 : index
    %c0_16 = arith.constant 0 : index
    %26 = vector.load %arg7[%c0_15, %c0_16] : memref<1x128xf32, #tpu.memory_space<vmem>>, vector<1x128xf32>
    %27 = arith.addf %25, %26 : vector<1x128xf32>
    %c0_17 = arith.constant 0 : index
    %c0_18 = arith.constant 0 : index
    %c0_19 = arith.constant 0 : index
    %28 = vector.load %arg12[%c0_17, %c0_18, %c0_19] : memref<1x1x128xf32, #tpu.memory_space<vmem>>, vector<1x1x128xf32>
    %29 = vector.shape_cast %28 : vector<1x1x128xf32> to vector<1x128xf32>
    %30 = vector.shape_cast %27 : vector<1x128xf32> to vector<1x1x128xf32>
    tpu.vector_store %arg12[%c0_17, %c0_18, %c0_19], %30 {strides = array<i32>} : memref<1x1x128xf32, #tpu.memory_space<vmem>>, vector<1x1x128xf32>,
    %31 = arith.truncf %17 : vector<8x128xf32> to vector<8x128xbf16>
    %c0_20 = arith.constant 0 : index
    %c0_21 = arith.constant 0 : index
    %32 = vector.load %arg8[%c0_20, %c0_21] : memref<128x128xbf16, #tpu.memory_space<vmem>>, vector<128x128xbf16>
    %cst_22 = arith.constant dense<0.000000e+00> : vector<8x128xf32>
    %33 = tpu.matmul %31, %32, %cst_22 {dimension_numbers = #tpu.dot_dimension_numbers<[1], [0], [0], [1], [0, 0, 1, 1], [], []>} : vector<8x128xbf16>, vector<128x128xbf16>, vector<8x128xf32> -> vector<8x128xf32>
    %c0_23 = arith.constant 0 : index
    %c0_24 = arith.constant 0 : index
    %34 = vector.load %arg9[%c0_23, %c0_24] : memref<1x128xf32, #tpu.memory_space<vmem>>, vector<1x128xf32>
    %35 = vector.broadcast %34 : vector<1x128xf32> to vector<8x128xf32>
    %36 = arith.addf %33, %35 : vector<8x128xf32>
    %c0_25 = arith.constant 0 : index
    %c0_26 = arith.constant 0 : index
    %c0_27 = arith.constant 0 : index
    %37 = vector.load %arg11[%c0_25, %c0_26, %c0_27] : memref<1x8x128xf32, #tpu.memory_space<vmem>>, vector<1x8x128xf32>
    %38 = vector.shape_cast %37 : vector<1x8x128xf32> to vector<8x128xf32>
    %39 = vector.shape_cast %36 : vector<8x128xf32> to vector<1x8x128xf32>
    tpu.vector_store %arg11[%c0_25, %c0_26, %c0_27], %39 {strides = array<i32>} : memref<1x8x128xf32, #tpu.memory_space<vmem>>, vector<1x8x128xf32>,
    %c0_28 = arith.constant 0 : index
    %c0_29 = arith.constant 0 : index
    %40 = vector.load %arg14[%c0_28, %c0_29] : memref<8x128xf32, #tpu.memory_space<vmem>>, vector<8x128xf32>
    tpu.vector_store %arg14[%c0_28, %c0_29], %17 {strides = array<i32>} : memref<8x128xf32, #tpu.memory_space<vmem>>, vector<8x128xf32>,
    %41 = arith.index_cast %arg0 : i32 to index
    %42 = memref.load %arg1[%41] : memref<2xi32, #tpu.memory_space<smem>>
    %43 = arith.index_cast %42 : i32 to index
    %c0_30 = arith.constant 0 : index
    %44 = vector.load %arg14[%43, %c0_30] : memref<8x128xf32, #tpu.memory_space<vmem>>, vector<1x128xf32>
    %45 = arith.truncf %44 : vector<1x128xf32> to vector<1x128xbf16>
    %c0_31 = arith.constant 0 : index
    %c0_32 = arith.constant 0 : index
    %46 = vector.load %arg10[%c0_31, %c0_32] : memref<128x128xbf16, #tpu.memory_space<vmem>>, vector<128x128xbf16>
    %cst_33 = arith.constant dense<0.000000e+00> : vector<1x128xf32>
    %47 = tpu.matmul %45, %46, %cst_33 {dimension_numbers = #tpu.dot_dimension_numbers<[1], [0], [0], [1], [0, 0, 1, 1], [], []>} : vector<1x128xbf16>, vector<128x128xbf16>, vector<1x128xf32> -> vector<1x128xf32>
    %48 = arith.negf %47 : vector<1x128xf32>
    %49 = math.exp %48 : vector<1x128xf32>
    %cst_34 = arith.constant 1.000000e+00 : f32
    %50 = vector.broadcast %cst_34 : f32 to vector<1x128xf32>
    %51 = arith.addf %50, %49 : vector<1x128xf32>
    %52 = arith.divf %50, %51 : vector<1x128xf32>
    %c0_35 = arith.constant 0 : index
    %c0_36 = arith.constant 0 : index
    %c0_37 = arith.constant 0 : index
    %53 = vector.load %arg13[%c0_35, %c0_36, %c0_37] : memref<1x1x128xf32, #tpu.memory_space<vmem>>, vector<1x1x128xf32>
    %54 = vector.shape_cast %53 : vector<1x1x128xf32> to vector<1x128xf32>
    %55 = vector.shape_cast %52 : vector<1x128xf32> to vector<1x1x128xf32>
    tpu.vector_store %arg13[%c0_35, %c0_36, %c0_37], %55 {strides = array<i32>} : memref<1x1x128xf32, #tpu.memory_space<vmem>>, vector<1x1x128xf32>,
    return
  }
  func.func @transform_0(%arg0: i32, %arg1: memref<2xi32, #tpu.memory_space<smem>>) -> (i32, i32, i32) {
    %c0_i32 = arith.constant 0 : i32
    %c0_i32_0 = arith.constant 0 : i32
    %c0_i32_1 = arith.constant 0 : i32
    return %arg0, %c0_i32, %c0_i32_0 : i32, i32, i32
  }
  func.func @transform_1(%arg0: i32, %arg1: memref<2xi32, #tpu.memory_space<smem>>) -> (i32, i32, i32) {
    %c0_i32 = arith.constant 0 : i32
    %c0_i32_0 = arith.constant 0 : i32
    %c0_i32_1 = arith.constant 0 : i32
    return %arg0, %c0_i32, %c0_i32_0 : i32, i32, i32
  }
  func.func @transform_2(%arg0: i32, %arg1: memref<2xi32, #tpu.memory_space<smem>>) -> (i32, i32) {
    %c0_i32 = arith.constant 0 : i32
    %c0_i32_0 = arith.constant 0 : i32
    %c0_i32_1 = arith.constant 0 : i32
    return %c0_i32, %c0_i32_0 : i32, i32
  }
  func.func @transform_3(%arg0: i32, %arg1: memref<2xi32, #tpu.memory_space<smem>>) -> (i32, i32) {
    %c0_i32 = arith.constant 0 : i32
    %c0_i32_0 = arith.constant 0 : i32
    %c0_i32_1 = arith.constant 0 : i32
    return %c0_i32, %c0_i32_0 : i32, i32
  }
  func.func @transform_4(%arg0: i32, %arg1: memref<2xi32, #tpu.memory_space<smem>>) -> (i32, i32) {
    %c0_i32 = arith.constant 0 : i32
    %c0_i32_0 = arith.constant 0 : i32
    %c0_i32_1 = arith.constant 0 : i32
    return %c0_i32, %c0_i32_0 : i32, i32
  }
  func.func @transform_5(%arg0: i32, %arg1: memref<2xi32, #tpu.memory_space<smem>>) -> (i32, i32) {
    %c0_i32 = arith.constant 0 : i32
    %c0_i32_0 = arith.constant 0 : i32
    %c0_i32_1 = arith.constant 0 : i32
    return %c0_i32, %c0_i32_0 : i32, i32
  }
  func.func @transform_6(%arg0: i32, %arg1: memref<2xi32, #tpu.memory_space<smem>>) -> (i32, i32) {
    %c0_i32 = arith.constant 0 : i32
    %c0_i32_0 = arith.constant 0 : i32
    %c0_i32_1 = arith.constant 0 : i32
    return %c0_i32, %c0_i32_0 : i32, i32
  }
  func.func @transform_7(%arg0: i32, %arg1: memref<2xi32, #tpu.memory_space<smem>>) -> (i32, i32) {
    %c0_i32 = arith.constant 0 : i32
    %c0_i32_0 = arith.constant 0 : i32
    %c0_i32_1 = arith.constant 0 : i32
    return %c0_i32, %c0_i32_0 : i32, i32
  }
  func.func @transform_8(%arg0: i32, %arg1: memref<2xi32, #tpu.memory_space<smem>>) -> (i32, i32) {
    %c0_i32 = arith.constant 0 : i32
    %c0_i32_0 = arith.constant 0 : i32
    %c0_i32_1 = arith.constant 0 : i32
    return %c0_i32, %c0_i32_0 : i32, i32
  }
  func.func @transform_9(%arg0: i32, %arg1: memref<2xi32, #tpu.memory_space<smem>>) -> (i32, i32, i32) {
    %c0_i32 = arith.constant 0 : i32
    %c0_i32_0 = arith.constant 0 : i32
    %c0_i32_1 = arith.constant 0 : i32
    return %arg0, %c0_i32, %c0_i32_0 : i32, i32, i32
  }
  func.func @transform_10(%arg0: i32, %arg1: memref<2xi32, #tpu.memory_space<smem>>) -> (i32, i32, i32) {
    %c0_i32 = arith.constant 0 : i32
    %c0_i32_0 = arith.constant 0 : i32
    %c0_i32_1 = arith.constant 0 : i32
    return %arg0, %c0_i32, %c0_i32_0 : i32, i32, i32
  }
  func.func @transform_11(%arg0: i32, %arg1: memref<2xi32, #tpu.memory_space<smem>>) -> (i32, i32, i32) {
    %c0_i32 = arith.constant 0 : i32
    %c0_i32_0 = arith.constant 0 : i32
    %c0_i32_1 = arith.constant 0 : i32
    return %arg0, %c0_i32, %c0_i32_0 : i32, i32, i32
  }
}

</mosaic_0001>

<bundles_post_ra>
// kernel: tpu_custom_call.1
= control target key start
LH: loop header
LB: loop body
LE: loop exit
PB: predicated region body
PF: predicated region fallthrough
CT: control target
= control target key end

     0   :  { %s1779_s24 = smov [#allocation4]   ;;  %s2112_s0 = inlined_call_operand.hbm [shape: s32[2], index: 0, kind: input, shape index: {}]   ;;  %s2113_s1 = inlined_call_operand.hbm [shape: bf16[2,8,128], index: 1, kind: input, shape index: {}]   ;;  %s2114_s2 = inlined_call_operand.hbm [shape: bf16[2,8,128], index: 2, kind: input, shape index: {}]   ;;  %s2115_s3 = inlined_call_operand.hbm [shape: bf16[128,128], index: 3, kind: input, shape index: {}]   ;;  %s2116_s4 = inlined_call_operand.vmem [shape: f32[1,128], index: 4, kind: input, shape index: {}]   ;;  %s2117_s5 = inlined_call_operand.hbm [shape: bf16[128,128], index: 5, kind: input, shape index: {}]   ;;  %s2118_s6 = inlined_call_operand.vmem [shape: f32[1,128], index: 6, kind: input, shape index: {}]   ;;  %s2119_s7 = inlined_call_operand.hbm [shape: bf16[128,128], index: 7, kind: input, shape index: {}]   ;;  %s2120_s8 = inlined_call_operand.vmem [shape: f32[1,128], index: 8, kind: input, shape index: {}]   ;;  %s2121_s9 = inlined_call_operand.hbm [shape: bf16[128,128], index: 9, kind: input, shape index: {}]   ;;  %s2122_s10 = inlined_call_operand.hbm [shape: f32[2,8,128], index: 10, kind: output, shape index: {0}]   ;;  %s2123_s11 = inlined_call_operand.hbm [shape: f32[2,1,128], index: 11, kind: output, shape index: {1}]   ;;  %s2124_s12 = inlined_call_operand.hbm [shape: f32[2,1,128], index: 12, kind: output, shape index: {2}]  }
   0x1   :  { %2133 = sst [smem:[#allocation34_spill]] %s2115_s3  ;;  %s19_s23 = sshll.u32 %s2112_s0, 4  ;;  %s20_s23 = int_to_ptr.hbm [resolvable:$true] %s19_s23 }
   0x2   :  { %2134 = sst [smem:[#allocation35_spill]] %s2117_s5 }
   0x3   :  { %2135 = sst [smem:[#allocation36_spill]] %s2119_s7 }
   0x4   :  { %2136 = sst [smem:[#allocation37_spill]] %s2121_s9 }
   0x5   :  { %22 = dma.hbm_to_smem %s20_s23, 16, %s1779_s24, [#allocation3] }
   0x6   :  { %1733 = dma.done.wait [#allocation3], 16 }
   0x7   :  { %1734 = vsyncadd [#allocation3], 4294967280 }
   0x8   :  { %25 = sfence }
   0x9   :  { %26 = vsyncpa [#allocation6], 0 }
   0xa   :  { %28 = vsyncpa [#allocation6 + $0x1], 0 }
   0xb   :  { %29 = vsyncpa [#allocation9], 0 }
   0xc   :  { %31 = vsyncpa [#allocation9 + $0x1], 0 }
   0xd   :  { %32 = vsyncpa [#allocation12], 0 }
   0xe   :  { %33 = vsyncpa [#allocation15], 0 }
   0xf   :  { %34 = vsyncpa [#allocation7], 0 }
  0x10   :  { %36 = vsyncpa [#allocation7 + $0x1], 0 }
  0x11   :  { %37 = vsyncpa [#allocation18], 0 }
  0x12   :  { %39 = vsyncpa [#allocation18 + $0x1], 0  ;;  %s1855_s25 = smov 0   ;;  %s1857_s26 = smov 0  }
  0x13   :  { %s1859_s0 = smov 0   ;;  %s1861_s27 = smov 0  }
  0x14 LB: > { %2137 = sst [smem:[#allocation28_spill]] %s1765_s25  ;;  %s1879_s13 = sadd.s32 4294967295, %s1777_s27   ;;  %s1777_s27 = sphi %s1861_s27, %s2159_s27   ;;  %s1773_s0 = sphi %s1859_s0, %s2161_s0   ;;  %s1769_s26 = sphi %s1857_s26, %s2163_s26   ;;  %s1765_s25 = sphi %s1855_s25, %s2162_s25  }
  0x15   : > { %2138 = sst [smem:[#allocation29_spill]] %s1773_s0  ;;  %p1140_p0 = scmp.ge.s32.totalorder %s1777_s27, 1 }
  0x16   : > { %2139 = sst [smem:[#allocation30_spill]] %s1777_s27  ;;  %p66_p1 = scmp.eq.s32.totalorder %s1879_s13, 0 }
  0x17   : > { %s2140_s3 = sld [smem:[#allocation34_spill]]  ;;  %p327_p2 = scmp.lt.s32.totalorder %s1777_s27, 3 }
  0x18   : > { %s1780_s15 = smov [#allocation10]   ;;  %s2142_s5 = sld [smem:[#allocation35_spill]] }
  0x19   : > { %p1884_p3 = pnand %p1140_p0, %p327_p2  ;;  %s340_s16 = sshll.u32 %s1780_s15, 4  ;;  %s341_s16 = int_to_ptr.vmem [resolvable:$true] %s340_s16 }
  0x1a   : > { %s2144_s7 = sld [smem:[#allocation36_spill]]  ;;  %s1781_s24 = smov [#allocation11]  }
  0x1b   : > { %p1349_p4 = pneg %p1884_p3  ;;  %s357_s28 = sshll.u32 %s1781_s24, 4  ;;  %s358_s28 = int_to_ptr.vmem [resolvable:$true] %s357_s28 }
  0x1c   : > { %s1782_s29 = smov 64   ;;  %s1783_s15 = smov 4  }
  0x1d   : > { %s338_s30 = sshll.u32 %s2140_s3, 4  ;;  %p1896_p6 = pnand %p1349_p4, %p66_p1  ;;  %s339_s30 = int_to_ptr.hbm [resolvable:$true] %s338_s30 }
  0x1e   : > { %s355_s19 = sshll.u32 %s2142_s5, 4  ;;  %s2145_s9 = sld [smem:[#allocation37_spill]]  ;;  %s356_s19 = int_to_ptr.hbm [resolvable:$true] %s355_s19 }
  0x1f   : > { %1352 = dma.hbm_to_vmem [thread:$0]  (!%p1896_p6), %s339_s30, 1024, %s341_s16, [#allocation9], %s1782_s29, %s1782_s29, %s1783_s15  }
  0x20   : > { %s372_s23 = sshll.u32 %s2144_s7, 4  ;;  %s1784_s22 = smov [#allocation13]   ;;  %s373_s23 = int_to_ptr.hbm [resolvable:$true] %s372_s23 }
  0x21   : > { %1355 = dma.hbm_to_vmem [thread:$0]  (!%p1896_p6), %s356_s19, 1024, %s358_s28, [#allocation12], %s1782_s29, %s1782_s29, %s1783_s15  }
  0x22   : > { %s374_s24 = sshll.u32 %s1784_s22, 4  ;;  %s1785_s30 = smov [#allocation14]   ;;  %s375_s24 = int_to_ptr.vmem [resolvable:$true] %s374_s24 }
  0x23   : > { %1358 = dma.hbm_to_vmem [thread:$0]  (!%p1896_p6), %s373_s23, 1024, %s375_s24, [#allocation12], %s1782_s29, %s1782_s29, %s1783_s15  }
  0x24   : > { %s389_s21 = sshll.u32 %s2145_s9, 4  ;;  %s391_s16 = sshll.u32 %s1785_s30, 4  ;;  %s390_s21 = int_to_ptr.hbm [resolvable:$true] %s389_s21  ;;  %s392_s16 = int_to_ptr.vmem [resolvable:$true] %s391_s16 }
  0x25   : > { %1361 = dma.hbm_to_vmem [thread:$0]  (!%p1896_p6), %s390_s21, 1024, %s392_s16, [#allocation15], %s1782_s29, %s1782_s29, %s1783_s15  }
  0x26   : > { %s2125_s19 = sadd.s32 4294967294, %s1777_s27   ;;  %s1916_s28 = sadd.s32 1, %s1777_s27  }
  0x27   : > { %2146 = sst [smem:[#allocation31_spill]] %s1916_s28  ;;  %s49_s17 = ssub.s32 %s1777_s27, %s1916_s28 }
  0x28   : > { %s52_s18 = sadd.s32 1, %s1773_s0  ;;  %p50_p7 = scmp.eq.s32.totalorder %s49_s17, 0 }
  0x29   : > { %p59_p8 = scmp.ne.s32.totalorder %s1773_s0, %s1769_s26  ;;  %p60_p9 = scmp.eq.s32.totalorder %s1777_s27, 0 }
  0x2a   : > { %p65_p10 = scmp.ne.s32.totalorder %s1769_s26, %s1765_s25  ;;  %p262_p13 = scmp.eq.s32.totalorder %s1879_s13, 1 }
  0x2b   : > { %s1927_s23 = scalar_select %p50_p7, %s1773_s0, %s52_s18  }
  0x2c   : > { %p1929_p11 = por %p60_p9, %p59_p8  ;;  %p1935_p12 = por %p66_p1, %p65_p10 }
  0x2d   : > { %2147 = sst [smem:[#allocation32_spill]] %s1927_s23  ;;  %p268_p0 = scmp.eq.s32.totalorder %s2125_s19, 1 }
  0x2e   : > { %p1383_p2 = scmp.lt.s32.totalorder %s1777_s27, 2  ;;  %s405_s29 = sand.u32 1, %s1773_s0  }
  0x2f   : > { %p1944_p4 = por %p262_p13, %p59_p8  ;;  %p1948_p6 = por %p268_p0, %p65_p10 }
  0x30   : > { %s1952_s24 = sshll.u32 %s405_s29, 2  ;;  %s1147_s30 = sshll.u32 %s1777_s27, 2 }
  0x31   : > { %s2151_s21 = scalar_select %p1948_p6, 1, 0 }
  0x32   : > { %s413_s18 = scalar_lea.hbm %s2113_s1, %s1147_s30  ;;  %s409_s3 = scalar_lea.vmem [#allocation5], %s1952_s24 }
  0x33   : > { %2152 = sst [smem:[#allocation33_spill]] %s2151_s21  ;;  %s417_s19 = sshll.u32 %s409_s3, 4  ;;  %s418_s19 = int_to_ptr.vmem [resolvable:$true] %s417_s19 }
  0x34   : > { %s415_s5 = sshll.u32 %s413_s18, 4  ;;  %p1961_p7 = pnand %p1383_p2, %p1929_p11  ;;  %s416_s5 = int_to_ptr.hbm [resolvable:$true] %s415_s5 }
  0x35   : > { %s432_s0 = scalar_lea.hbm %s2114_s2, %s1147_s30  ;;  %s424_s28 = sand.u32 1, %s1777_s27  }
  0x36   : > { %s406_s21 = scalar_lea.sflag [#allocation6], %s405_s29  ;;  %s1573_s16 = sshra.s32 %s416_s5, 4  ;;  %s1574_s16 = int_to_ptr.hbm [resolvable:$true] %s1573_s16 }
  0x37   : > { %s1575_s17 = scalar_lea.hbm %s1574_s16, 4  ;;  %p1577_p9 = pneg %p1961_p7 }
  0x38   : > { %p1576_p8 = scmp.ne.s32.totalorder %s1574_s16, %s1575_s17  ;;  %s1580_s18 = scalar_lea.hbm %s2113_s1, 8 }
  0x39   : > { %p1581_p13 = scmp.lt.s32.totalorder %s1574_s16, %s2113_s1  ;;  %p1582_p0 = scmp.lt.s32.totalorder %s1580_s18, %s1575_s17 }
  0x3a   : > { %p1578_p10 = pnand %p1577_p9, %p1576_p8 }
  0x3b   : > { %p1583_p2 = por %p1582_p0, %p1581_p13 }
  0x3c   : > { %p1579_p11 = pneg %p1578_p10 }
  0x3e   : > { %p1584_p5 = pnand %p1583_p2, %p1579_p11 }
  0x40   : > { %1587 = shalt.err (!%p1584_p5)
}
  0x41   : > { %1365 = dma.hbm_to_vmem [thread:$0]  (!%p1961_p7), %s416_s5, 64, %s418_s19, %s406_s21  }
  0x42   : > { %s434_s29 = sshll.u32 %s432_s0, 4  ;;  %s428_s30 = scalar_lea.vmem [#allocation8], %s1952_s24  ;;  %s435_s29 = int_to_ptr.hbm [resolvable:$true] %s434_s29 }
  0x43   : > { %s436_s27 = sshll.u32 %s428_s30, 4  ;;  %s425_s3 = scalar_lea.sflag [#allocation9], %s424_s28  ;;  %s437_s27 = int_to_ptr.vmem [resolvable:$true] %s436_s27 }
  0x44   : > { %s1603_s22 = sshra.s32 %s435_s29, 4  ;;  %s1610_s18 = scalar_lea.hbm %s2114_s2, 8  ;;  %s1604_s22 = int_to_ptr.hbm [resolvable:$true] %s1603_s22 }
  0x45   : > { %s1605_s25 = scalar_lea.hbm %s1604_s22, 4  ;;  %p1611_p5 = scmp.lt.s32.totalorder %s1604_s22, %s2114_s2 }
  0x46   : > { %p1606_p8 = scmp.ne.s32.totalorder %s1604_s22, %s1605_s25  ;;  %p1612_p13 = scmp.lt.s32.totalorder %s1610_s18, %s1605_s25 }
  0x48   : > { %p1608_p10 = pnand %p1606_p8, %p1577_p9  ;;  %p1613_p0 = por %p1612_p13, %p1611_p5 }
  0x4a   : > { %p1609_p11 = pneg %p1608_p10 }
  0x4c   : > { %p1614_p2 = pnand %p1613_p0, %p1609_p11 }
  0x4e   : > { %1617 = shalt.err (!%p1614_p2)
}
  0x4f   : > { %1368 = dma.hbm_to_vmem [thread:$0]  (!%p1961_p7), %s435_s29, 64, %s437_s27, %s425_s3  }
  0x50   : > { %445 = sbr.rel (%p1884_p3) target bundleno = 435 (0x1b3), region = 56  ;;  %s1997_s0 = sand.u32 (!%p1884_p3), 1, %s1769_s26  }
  0x51   : > { %s1151_s19 = sshll.u32 (!%p1884_p3), %s1997_s0, 2  ;;  %s448_s28 = scalar_lea.sflag (!%p1884_p3), [#allocation6], %s1997_s0 }
  0x52   : > { %s2001_s21 = scalar_lea.vmem (!%p1884_p3), [#allocation5], %s1151_s19 }
  0x55   : > { %1736 = dma.done.wait (%p1935_p12), %s448_s28, 64  }
  0x56   : > { %1738 = vsyncadd (%p1935_p12), %s448_s28, 4294967232  ;;  %s457_s7 = sand.u32 1, %s1879_s13   ;;  %s2010_s27 = scalar_lea.vmem [#allocation8], %s1151_s19 }
  0x57   : > { %s458_s25 = scalar_lea.sflag [#allocation9], %s457_s7 }
  0x58   : > { %1740 = dma.done.wait (%p1935_p12), %s458_s25, 64  }
  0x59   : > { %1742 = vsyncadd (%p1935_p12), %s458_s25, 4294967232 }
  0x5a   : > { %1744 = dma.done.wait (%p66_p1), [#allocation9], 1024  }
  0x5b   : > { %1746 = vsyncadd (%p66_p1), [#allocation9], 4294966272 }
  0x5c   : > { %1748 = dma.done.wait (%p66_p1), [#allocation12], 2048  }
  0x5d   : > { %1750 = vsyncadd (%p66_p1), [#allocation12], 4294965248 }
  0x5e   : > { %1752 = dma.done.wait (%p66_p1), [#allocation15], 1024  }
  0x5f   : > { %1754 = vsyncadd (%p66_p1), [#allocation15], 4294966272  ;;  %v1298_v0 = vld [vmem:[#allocation10 + $0x38] sm:$0xff]  ;;  %v1297_v1 = vld [vmem:[#allocation10 + $0x30] sm:$0xff]  ;;  %v1786_v42 = vmov 8.0   ;;  %s803_s24 = sld [smem:[#allocation4 + %s1879_s13]] }
  0x60   : > { %609 = vmatpush.bf16.msra.mxu0 %v1298_v0  ;;  %v1314_v2 = vld [vmem:[#allocation13 + $0x38] sm:$0xff]  ;;  %v1296_v4 = vld [vmem:[#allocation10 + $0x28] sm:$0xff]  ;;  %v1313_v5 = vld [vmem:[#allocation13 + $0x30] sm:$0xff]  ;;  %1431 = vrcp.f32 %v1786_v42  ;;  %s1288_s29 = sshll.u32 %s1879_s13, 3  ;;  %s1157_s30 = sshll.u32 %s1997_s0, 3 }
  0x61   : > { %v1322_v3 = vld [vmem:[#allocation14 + $0x38] sm:$0xff]  ;;  %788 = vmatpush.bf16.msra.mxu2 %v1314_v2  ;;  %v1321_v6 = vld [vmem:[#allocation14 + $0x30] sm:$0xff]  ;;  %v1312_v7 = vld [vmem:[#allocation13 + $0x28] sm:$0xff]  ;;  %s923_s16 = scalar_lea.hbm %s2122_s10, %s1288_s29  ;;  %s521_s9 = scalar_lea.vmem [#allocation16], %s1157_s30 }
  0x62   : > { %871 = vmatpush.bf16.msra.mxu3 %v1322_v3  ;;  %v1295_v8 = vld [vmem:[#allocation10 + $0x20] sm:$0xff]  ;;  %v1320_v9 = vld [vmem:[#allocation14 + $0x28] sm:$0xff]  ;;  %v1294_v11 = vld [vmem:[#allocation10 + $0x18] sm:$0xff]  ;;  %s925_s5 = sshll.u32 %s521_s9, 4  ;;  %s927_s19 = sshll.u32 %s923_s16, 4  ;;  %s926_s5 = int_to_ptr.vmem [resolvable:$true] %s925_s5  ;;  %s928_s19 = int_to_ptr.hbm [resolvable:$true] %s927_s19 }
  0x63   : > { %v1311_v10 = vld [vmem:[#allocation13 + $0x20] sm:$0xff]  ;;  %v534_v12 = vld [vmem:[%s2001_s21] sm:$0xf]  ;;  %v536_v13 = vld [vmem:[%s2010_s27] sm:$0xf]  ;;  %s905_s28 = scalar_lea.sflag [#allocation7], %s1997_s0 }
  0x64   : > { %610 = vmatpush.bf16.msra.mxu0 %v1297_v1  ;;  %v535_v14 = vunpack.c.l.bf16 %v534_v12  ;;  %v537_v15 = vunpack.c.l.bf16 %v536_v13  ;;  %v1310_v16 = vld [vmem:[#allocation13 + $0x18] sm:$0xff]  ;;  %v1293_v17 = vld [vmem:[#allocation10 + $0x10] sm:$0xff]  ;;  %v1292_v19 = vld [vmem:[#allocation10 + $0x8] sm:$0xff]  ;;  %s1647_s21 = sshra.s32 %s928_s19, 4  ;;  %s1653_s20 = scalar_lea.hbm %s2122_s10, 16  ;;  %s1648_s21 = int_to_ptr.hbm [resolvable:$true] %s1647_s21 }
  0x65   : > { %789 = vmatpush.bf16.msra.mxu2 %v1313_v5  ;;  %v1291_v21 = vld [vmem:[#allocation10] sm:$0xff]  ;;  %v1309_v23 = vld [vmem:[#allocation13 + $0x10] sm:$0xff]  ;;  %v1306_v25 = vld [vmem:[#allocation11 + $0x38] sm:$0xff]  ;;  %s804_s23 = scalar_lea.vmem [#allocation2], %s803_s24  ;;  %s1649_s25 = scalar_lea.hbm %s1648_s21, 8 }
  0x66   : > { %872 = vmatpush.bf16.msra.mxu3 %v1321_v6  ;;  %v538_v18 = vadd.f32 %v537_v15, %v535_v14  ;;  %v1319_v24 = vld [vmem:[#allocation14 + $0x20] sm:$0xff]  ;;  %705 = vmatpush.bf16.msra.mxu1 %v1306_v25  ;;  %v1308_v26 = vld [vmem:[#allocation13 + $0x8] sm:$0xff]  ;;  %v1318_v27 = vld [vmem:[#allocation14 + $0x18] sm:$0xff]  ;;  %v1432_v43 = vpop.eup %1431  ;;  %p1650_p1 = scmp.ne.s32.totalorder %s1648_s21, %s1649_s25  ;;  %p1654_p7 = scmp.lt.s32.totalorder %s1648_s21, %s2122_s10 }
  0x67   : > { %v1305_v28 = vld [vmem:[#allocation11 + $0x30] sm:$0xff]  ;;  %v1307_v29 = vld [vmem:[#allocation13] sm:$0xff]  ;;  %v1304_v31 = vld [vmem:[#allocation11 + $0x28] sm:$0xff]  ;;  %v632_v48 = vmul.f32 8.0, %v1432_v43  ;;  %vm636_vm0 = vweird.f32 %v1432_v43  ;;  %p1655_p9 = scmp.lt.s32.totalorder %s1653_s20, %s1649_s25 }
  0x68   : > { %611 = vmatpush.bf16.msra.mxu0 %v1296_v4  ;;  %v539_v20 = vmul.f32 0.5, %v538_v18  ;;  %v1317_v30 = vld [vmem:[#allocation14 + $0x10] sm:$0xff]  ;;  %v1316_v32 = vld [vmem:[#allocation14 + $0x8] sm:$0xff]  ;;  %v1303_v33 = vld [vmem:[#allocation11 + $0x20] sm:$0xff]  ;;  %p1651_p3 = pnand %p1650_p1, %p1944_p4 }
  0x69   : > { %790 = vmatpush.bf16.msra.mxu2 %v1312_v7  ;;  %v1315_v34 = vld [vmem:[#allocation14] sm:$0xff]  ;;  %v1302_v35 = vld [vmem:[#allocation11 + $0x18] sm:$0xff]  ;;  %v1301_v36 = vld [vmem:[#allocation11 + $0x10] sm:$0xff]  ;;  %v633_v49 = vsub.f32 1.0, %v632_v48  ;;  %p1656_p8 = por %p1655_p9, %p1654_p7 }
  0x6a   : > { %873 = vmatpush.bf16.msra.mxu3 %v1320_v9  ;;  %v540_v22 = vpack.c.bf16 %v535_v14, %v539_v20  ;;  %706 = vmatpush.bf16.msra.mxu1 %v1305_v28  ;;  %v1300_v37 = vld [vmem:[#allocation11 + $0x8] sm:$0xff]  ;;  %v1299_v38 = vld [vmem:[#allocation11] sm:$0xff]  ;;  %p1652_p12 = pneg %p1651_p3 }
  0x6b   : > { %v1429_v39 = vld [vmem:[%s2116_s4] ss:$0 sm:$0xff]  ;;  %v634_v54 = vmul.f32 %v1432_v43, %v633_v49 }
  0x6c   : > { %612 = vmatpush.bf16.msra.mxu0 %v1295_v8  ;;  %v1430_v0 = vld [vmem:[%s2120_s8] ss:$0 sm:$0xff]  ;;  %p1657_p10 = pnand %p1656_p8, %p1652_p12 }
  0x6d   : > { %791 = vmatpush.bf16.msra.mxu2 %v1311_v10  ;;  %v635_v57 = vadd.f32 %v1432_v43, %v634_v54 }
  0x6e   : > { %874 = vmatpush.bf16.msra.mxu3 %v1319_v24  ;;  %707 = vmatpush.bf16.msra.mxu1 %v1304_v31 }
  0x6f   : > { %v637_v60 = vsel %vm636_vm0, %v1432_v43, %v635_v57 }
  0x70   : > { %613 = vmatpush.bf16.msra.mxu0 %v1294_v11 }
  0x71   : > { %792 = vmatpush.bf16.msra.mxu2 %v1310_v16 }
  0x72   : > { %875 = vmatpush.bf16.msra.mxu3 %v1318_v27  ;;  %708 = vmatpush.bf16.msra.mxu1 %v1303_v33 }
  0x74   : > { %614 = vmatpush.bf16.msra.mxu0 %v1293_v17 }
  0x75   : > { %793 = vmatpush.bf16.msra.mxu2 %v1309_v23 }
  0x76   : > { %876 = vmatpush.bf16.msra.mxu3 %v1317_v30  ;;  %709 = vmatpush.bf16.msra.mxu1 %v1302_v35 }
  0x78   : > { %615 = vmatpush.bf16.msra.mxu0 %v1292_v19 }
  0x79   : > { %794 = vmatpush.bf16.msra.mxu2 %v1308_v26 }
  0x7a   : > { %877 = vmatpush.bf16.msra.mxu3 %v1316_v32  ;;  %710 = vmatpush.bf16.msra.mxu1 %v1301_v36 }
  0x7c   : > { %616 = vmatpush.bf16.msra.mxu0 %v1291_v21 }
  0x7d   : > { %795 = vmatpush.bf16.msra.mxu2 %v1307_v29 }
  0x7e   : > { %878 = vmatpush.bf16.msra.mxu3 %v1315_v34  ;;  %711 = vmatpush.bf16.msra.mxu1 %v1300_v37 }
  0x7f   : > { %617 = vmatmul.bf16.vlgmr.msra.gmra.mxu0 %v540_v22 }
  0x82   : > { %712 = vmatpush.bf16.msra.mxu1 %v1299_v38 }
  0xfc   : > { %v618_v40 = vpop.f32.mrf.mxu0 }
  0xfd   : > { %v619_v41 = vadd.f32 %v1429_v39, %v618_v40 }
  0xff   : > { %1433 = vtanh.f32 %v619_v41 }
 0x104   : > { %v620_v44 = vpop.f32.mrf.mxu0 }
 0x105   : > { %v1434_v45 = vpop.eup %1433  ;;  %v621_v46 = vadd.f32 %v1429_v39, %v620_v44 }
 0x106   : > { %802 = vst [vmem:[#allocation2] sm:$0xff] %v1434_v45  ;;  %v719_v47 = vpack.c.bf16 %v1434_v45, %v1434_v45 }
 0x107   : > { %1435 = vtanh.f32 %v621_v46 }
 0x108   : > { %796 = vmatmul.bf16.vlgmr.msra.gmra.mxu2 %v719_v47 }
 0x10d   : > { %v1436_v50 = vpop.eup %1435  ;;  %v805_v51 = vld [vmem:[%s804_s23] sm:$0x1] }
 0x10e   : > { %v625_v52 = vrot.slane %v1436_v50, 4  ;;  %v806_v53 = vpack.c.bf16 %v805_v51, %v805_v51 }
 0x110   : > { %879 = vmatmul.bf16.vlgmr.msra.gmra.mxu3 %v806_v53  ;;  %v626_v55 = vadd.f32 %v1436_v50, %v625_v52 }
 0x112   : > { %v627_v56 = vrot.slane %v626_v55, 2 }
 0x114   : > { %v628_v58 = vadd.f32 %v627_v56, %v626_v55 }
 0x116   : > { %v629_v59 = vrot.slane %v628_v58, 1 }
 0x118   : > { %v630_v61 = vadd.f32 %v629_v59, %v628_v58 }
 0x11a   : > { %v638_v62 = vmul.f32 %v637_v60, %v630_v61 }
 0x11c   : > { %v639_v63 = vpack.c.bf16 %v638_v62, %v638_v62 }
 0x11e   : > { %713 = vmatmul.bf16.vlgmr.msra.gmra.mxu1 %v639_v63 }
 0x18b   : > { %v797_v1 = vpop.f32.mrf.mxu2 }
 0x18c   : > { %v798_v2 = vadd.f32 %v1430_v0, %v797_v1 }
 0x18e   : > { %801 = vst [vmem:[%s521_s9] sm:$0xff] %v798_v2 }
 0x18f   : > { %1660 = shalt.err (!%p1657_p10)
}
 0x190   : > { %1343 = dma.vmem_to_hbm [thread:$0]  (%p1944_p4), %s926_s5, 128, %s928_s19, %s905_s28   ;;  %v656_v6 = vld [vmem:[%s2118_s6] sm:$0x1] }
 0x191   : > { %s936_s3 = scalar_lea.hbm %s2123_s11, %s1879_s13  ;;  %s527_s17 = scalar_lea.vmem [#allocation17], %s1997_s0 }
 0x192   : > { %s938_s18 = sshll.u32 %s527_s17, 4  ;;  %s940_s9 = sshll.u32 %s936_s3, 4  ;;  %s939_s18 = int_to_ptr.vmem [resolvable:$true] %s938_s18  ;;  %s941_s9 = int_to_ptr.hbm [resolvable:$true] %s940_s9 }
 0x193   : > { %v799_v3 = vpop.f32.mrf.mxu2  ;;  %v880_v4 = vpop.f32.mrf.mxu3  ;;  %s2063_s5 = scalar_lea.sflag [#allocation18], %s457_s7  ;;  %s1675_s19 = sshra.s32 %s941_s9, 4  ;;  %s1676_s19 = int_to_ptr.hbm [resolvable:$true] %s1675_s19 }
 0x194   : > { %v1286_v5 = vmul.f32 -1.442695, %v880_v4  ;;  %s1677_s28 = scalar_lea.hbm %s1676_s19, 1  ;;  %s1681_s27 = scalar_lea.hbm %s2123_s11, 2 }
 0x195   : > { %p1678_p11 = scmp.ne.s32.totalorder %s1676_s19, %s1677_s28  ;;  %p1682_p0 = scmp.lt.s32.totalorder %s1676_s19, %s2123_s11 }
 0x196   : > { %1437 = vpow2.f32 %v1286_v5  ;;  %p1683_p2 = scmp.lt.s32.totalorder %s1681_s27, %s1677_s28 }
 0x197   : > { %p1679_p5 = pnand %p1678_p11, %p1944_p4 }
 0x198   : > { %p1684_p1 = por %p1683_p2, %p1682_p0 }
 0x199   : > { %p1680_p13 = pneg %p1679_p5 }
 0x19b   : > { %v714_v7 = vpop.f32.mrf.mxu1  ;;  %v882_v8 = vpop.f32.mrf.mxu3  ;;  %p1685_p3 = pnand %p1684_p1, %p1680_p13 }
 0x19c   : > { %v1438_v9 = vpop.eup %1437  ;;  %v715_v10 = vadd.f32 %v714_v7, %v656_v6 }
 0x19d   : > { %v887_v11 = vadd.f32 1.0, %v1438_v9 }
 0x19e   : > { %718 = vst [vmem:[%s527_s17] sm:$0x1] %v715_v10 }
 0x19f   : > { %1439 = vrcp.f32 %v887_v11 }
 0x1a0   : > { %1688 = shalt.err (!%p1685_p3)
}
 0x1a1   : > { %1344 = dma.vmem_to_hbm [thread:$0]  (%p1944_p4), %s939_s18, 16, %s941_s9, %s2063_s5   ;;  %v899_v16 = vand.u32 2147483648, %v887_v11  ;;  %v897_v18 = vand.u32 2147483647, %v887_v11  ;;  %vm893_vm2 = vweird.f32 %v887_v11 }
 0x1a2   : > { %s949_s23 = scalar_lea.hbm %s2124_s12, %s1879_s13  ;;  %s533_s29 = scalar_lea.vmem [#allocation19], %s1997_s0 }
 0x1a3   : > { %v716_v12 = vpop.f32.mrf.mxu1  ;;  %s951_s30 = sshll.u32 %s533_s29, 4  ;;  %s953_s3 = sshll.u32 %s949_s23, 4  ;;  %v900_v20 = vor.u32 1.1754944e-38, %v899_v16  ;;  %vm898_vm4 = vcmp.eq.f32.partialorder %v897_v18, 8.507059e+37  ;;  %s952_s30 = int_to_ptr.vmem [resolvable:$true] %s951_s30  ;;  %s954_s3 = int_to_ptr.hbm [resolvable:$true] %s953_s3 }
 0x1a4   : > { %s1703_s22 = sshra.s32 %s954_s3, 4  ;;  %s1709_s17 = scalar_lea.hbm %s2124_s12, 2  ;;  %s1704_s22 = int_to_ptr.hbm [resolvable:$true] %s1703_s22 }
 0x1a5   : > { %v1440_v13 = vpop.eup %1439  ;;  %s1705_s13 = scalar_lea.hbm %s1704_s22, 1  ;;  %p1710_p8 = scmp.lt.s32.totalorder %s1704_s22, %s2124_s12 }
 0x1a6   : > { %v889_v14 = vmul.f32 %v1440_v13, %v887_v11  ;;  %vm894_vm1 = vweird.f32 %v1440_v13  ;;  %p1706_p12 = scmp.ne.s32.totalorder %s1704_s22, %s1705_s13  ;;  %p1711_p10 = scmp.lt.s32.totalorder %s1709_s17, %s1705_s13 }
 0x1a7   : > { %vm895_vm3 = vmor %vm893_vm2, %vm894_vm1 }
 0x1a8   : > { %v890_v15 = vsub.f32 1.0, %v889_v14  ;;  %p1707_p7 = pnand %p1706_p12, %p1944_p4  ;;  %p1712_p11 = por %p1711_p10, %p1710_p8 }
 0x1aa   : > { %v891_v17 = vmul.f32 %v1440_v13, %v890_v15  ;;  %p1708_p9 = pneg %p1707_p7 }
 0x1ac   : > { %v892_v19 = vadd.f32 %v1440_v13, %v891_v17  ;;  %p1713_p5 = pnand %p1712_p11, %p1708_p9 }
 0x1ae   : > { %v896_v21 = vsel %vm895_vm3, %v1440_v13, %v892_v19 }
 0x1af   : > { %v901_v22 = vsel %vm898_vm4, %v900_v20, %v896_v21 }
 0x1b0   : > { %903 = vst [vmem:[%s533_s29] sm:$0x1] %v901_v22 }
 0x1b1   : > { %1716 = shalt.err (!%p1713_p5)
}
 0x1b2   : > { %1345 = dma.vmem_to_hbm [thread:$0]  (%p1944_p4), %s952_s30, 16, %s954_s3, %s2063_s5  }
 0x1b3 PF: > { %s2154_s19 = sld [smem:[#allocation28_spill]] }
 0x1b4   : > { %s2156_s21 = sld [smem:[#allocation30_spill]] }
 0x1b9   : > { %s965_s25 = sand.u32 1, %s2154_s19  }
 0x1ba   : > { %p2157_p13 = scmp.ge.s32.totalorder %s2156_s21, 2  ;;  %s966_s27 = scalar_lea.sflag [#allocation7], %s965_s25 }
 0x1bc   : > { %p1370_p0 = pnand %p2157_p13, %p1948_p6 }
 0x1be   : > { %p1371_p2 = pneg %p1370_p0 }
 0x1c0   : > { %1756 = dma.done.wait (%p1371_p2), %s966_s27, 128  }
 0x1c1   : > { %1758 = vsyncadd (%p1371_p2), %s966_s27, 4294967168  ;;  %s2158_s14 = sadd.s32 4294967294, %s2156_s21  }
 0x1c2   : > { %s975_s20 = sand.u32 1, %s2158_s14  }
 0x1c3   : > { %s976_s7 = scalar_lea.sflag [#allocation18], %s975_s20 }
 0x1c4   : > { %1760 = dma.done.wait (%p1371_p2), %s976_s7, 32  }
 0x1c5   : > { %1762 = vsyncadd (%p1371_p2), %s976_s7, 4294967264  ;;  %s2159_s27 = sld [smem:[#allocation31_spill]]  ;;  %s2162_s25 = smov %s1769_s26 }
 0x1c6   : > { %s2160_s15 = sld [smem:[#allocation29_spill]] }
 0x1c7   : > { %s2161_s0 = sld [smem:[#allocation32_spill]] }
 0x1cb   : > { %p42_p4 = scmp.ge.s32.totalorder %s2159_s27, 4  }
 0x1cc   : > { %s2163_s26 = smov %s2160_s15 }
 0x1cd   :  { %44 = sbr.rel (!%p42_p4) target bundleno = 20 (0x14), region = 163 }
 0x1d2   :  { %990 = vsyncpa [#allocation6], 1 }
 0x1d3   :  { %992 = vsyncpa [#allocation6 + $0x1], 1 }
 0x1d4   :  { %993 = vsyncpa [#allocation9], 1 }
 0x1d5   :  { %995 = vsyncpa [#allocation9 + $0x1], 1 }
 0x1d6   :  { %996 = vsyncpa [#allocation12], 1 }
 0x1d7   :  { %997 = vsyncpa [#allocation15], 1 }
 0x1d8   :  { %998 = vsyncpa [#allocation7], 1 }
 0x1d9   :  { %1000 = vsyncpa [#allocation7 + $0x1], 1 }
 0x1da   :  { %1001 = vsyncpa [#allocation18], 1 }
 0x1db   :  { %1003 = vsyncpa [#allocation18 + $0x1], 1 }

</bundles_post_ra>
